<compile_context>
chip_gen: v7x
topology: tpu7x:2x2x1
jax: 0.10.0
libtpu: 0.0.40
codegen_flags: <defaults>
</compile_context>

<pallas_src>
import jax
import jax.numpy as jnp
from jax.experimental import pallas as pl
from jax.experimental.pallas import tpu as pltpu

_LANE = 512                              # lane-dense last dim for the flattened path
_TARGET_BLOCK_BYTES = 6 * 1024 * 1024    # per array per block; in+out double-buffered ~24 MiB


def _rgb2hsv_kernel(x_ref, o_ref):
    # x_ref / o_ref: (3, blk_rows, width) float32 blocks.
    # Emulate torchvision to_pil_image: float [0,1] -> uint8 (truncation).
    r = jnp.floor(jnp.clip(x_ref[0], 0.0, 1.0) * 255.0)
    g = jnp.floor(jnp.clip(x_ref[1], 0.0, 1.0) * 255.0)
    b = jnp.floor(jnp.clip(x_ref[2], 0.0, 1.0) * 255.0)

    v = jnp.maximum(jnp.maximum(r, g), b)             # value (max)
    mn = jnp.minimum(jnp.minimum(r, g), b)
    diff = v - mn

    # v and diff are non-negative integers in [0,255] after clip+floor, so
    # maximum(.,1) is exactly the where(.>0,.,1) guard (cmp+select saved).
    # When v == 0, diff == 0 too, so s comes out 0 without an extra select.
    inv_v = 1.0 / jnp.maximum(v, 1.0)
    s = jnp.floor(255.0 * diff * inv_v + 0.5)

    # hue (cv2 8-bit convention, range [0, 180)).  When diff == 0 all channels
    # are equal, h_raw == 0 and the formula yields 0 without an extra select.
    inv_d = 1.0 / jnp.maximum(diff, 1.0)
    h_raw = jnp.where(
        v == r, g - b,
        jnp.where(v == g, (b - r) + 2.0 * diff, (r - g) + 4.0 * diff),
    )
    h = jnp.floor(h_raw * 30.0 * inv_d + 0.5)
    h = jnp.where(h < 0.0, h + 180.0, h)

    # Emulate torchvision to_tensor: uint8 -> float32 / 255.
    # Per-channel stores: no stacked (3, rows, width) temporary.
    scale = jnp.float32(1.0 / 255.0)
    o_ref[0] = (h * scale).astype(o_ref.dtype)
    o_ref[1] = (s * scale).astype(o_ref.dtype)
    o_ref[2] = (v * scale).astype(o_ref.dtype)


def _round_up(x, m):
    return -(-x // m) * m


def _pick_block_rows(rows, width):
    """Choose (blk_rows, grid): ~_TARGET_BLOCK_BYTES per array per block,
    rows-dim tile a multiple of 8 (or the full extent), and an even,
    near-balanced grid so both v7x TensorCores get work."""
    if rows <= 8:
        return rows, 1                         # full-extent block, single step
    bytes_per_row = 3 * width * 4
    max_blk = max(8, (_TARGET_BLOCK_BYTES // bytes_per_row) // 8 * 8)
    steps = pl.cdiv(rows, max_blk)
    if steps == 1:
        steps = 2                              # medium image: split across 2 TCs
    elif steps % 2 == 1:
        steps += 1                             # keep the parallel grid balanced on v7x
    blk = max(8, _round_up(pl.cdiv(rows, steps), 8))
    return blk, pl.cdiv(rows, blk)


def color_space_transform_rgb2hsv(img_chw):
    """img_chw: float (3, H, W) in [0,1] -> HSV float32 (3, H, W) (cv2/to_tensor scale)."""
    C, H, W = img_chw.shape
    assert C == 3, "RGB input expected"
    n = H * W

    x = img_chw.astype(jnp.float32)            # no-op for float32 inputs

    # Lane-dense flattened layout only when it is a free bitcast (n % 512 == 0);
    # otherwise run directly on (3, H, W) with full-W last dim.  No host-side
    # pad, no output crop: Pallas masks the ragged final rows-block itself.
    if n % _LANE == 0:
        rows, width = n // _LANE, _LANE
        x = x.reshape(3, rows, width)
    else:
        rows, width = H, W

    blk_rows, grid = _pick_block_rows(rows, width)

    out = pl.pallas_call(
        _rgb2hsv_kernel,
        out_shape=jax.ShapeDtypeStruct((3, rows, width), jnp.float32),
        grid=(grid,),
        in_specs=[pl.BlockSpec((3, blk_rows, width), lambda i: (0, i, 0))],
        out_specs=pl.BlockSpec((3, blk_rows, width), lambda i: (0, i, 0)),
        compiler_params=pltpu.CompilerParams(
            dimension_semantics=("parallel",),
            # ~6 MiB / array / block, double-buffered in+out ~= 24 MiB live:
            # above v5e's 16 MiB default scoped limit, inside the ~24-32 MiB
            # budget that keeps full double-buffering on v7x (64 MiB/TC).
            vmem_limit_bytes=48 * 1024 * 1024,
        ),
    )(x)

    return out.reshape(3, H, W)


def _reference_rgb2hsv(img_chw):
    """Pure-JAX reference mirroring the same uint8 cv2 pipeline (same op structure)."""
    u = jnp.floor(jnp.clip(img_chw.astype(jnp.float32), 0.0, 1.0) * 255.0)
    r, g, b = u[0], u[1], u[2]
    v = jnp.maximum(jnp.maximum(r, g), b)
    mn = jnp.minimum(jnp.minimum(r, g), b)
    diff = v - mn
    inv_v = 1.0 / jnp.maximum(v, 1.0)
    s = jnp.floor(255.0 * diff * inv_v + 0.5)
    inv_d = 1.0 / jnp.maximum(diff, 1.0)
    h_raw = jnp.where(v == r, g - b,
                      jnp.where(v == g, (b - r) + 2.0 * diff, (r - g) + 4.0 * diff))
    h = jnp.floor(h_raw * 30.0 * inv_d + 0.5)
    h = jnp.where(h < 0.0, h + 180.0, h)
    return jnp.stack([h, s, v], axis=0) * (1.0 / 255.0)


if __name__ == "__main__":
    key = jax.random.PRNGKey(0)
    # small image consistent with the module: 3-channel RGB, 16x16 spatial
    img = jax.random.uniform(key, (3, 16, 16), dtype=jnp.float32)
    out = jax.block_until_ready(color_space_transform_rgb2hsv(img))
    ref = _reference_rgb2hsv(img)
    assert out.shape == (3, 16, 16) and out.dtype == jnp.float32
    assert jnp.max(jnp.abs(out - ref)) < 1e-5

    # direct (3, H, W) path: ragged final rows-block, W % 128 != 0
    img2 = jax.random.uniform(jax.random.PRNGKey(1), (3, 40, 56), dtype=jnp.float32)
    out2 = jax.block_until_ready(color_space_transform_rgb2hsv(img2))
    assert out2.shape == (3, 40, 56)
    assert jnp.max(jnp.abs(out2 - _reference_rgb2hsv(img2))) < 1e-5

    # flattened lane-dense path: H*W % 512 == 0, reshape is a free bitcast
    img3 = jax.random.uniform(jax.random.PRNGKey(2), (3, 32, 64), dtype=jnp.float32)
    out3 = jax.block_until_ready(color_space_transform_rgb2hsv(img3))
    assert out3.shape == (3, 32, 64)
    assert jnp.max(jnp.abs(out3 - _reference_rgb2hsv(img3))) < 1e-5

    print("KERNEL_OK")
</pallas_src>

<mosaic_0001>
module attributes {stable_mosaic.version = 11 : i64} {
  func.func @_rgb2hsv_kernel(%arg0: i32, %arg1: memref<3x8x16xf32, #tpu.memory_space<vmem>>, %arg2: memref<3x8x16xf32, #tpu.memory_space<vmem>>) attributes {dimension_semantics = [#tpu.dimension_semantics<parallel>], iteration_bounds = array<i64: 2>, scalar_prefetch = 0 : i64, scratch_operands = 0 : i64, tpu.core_type = #tpu.core_type<tc>, window_params = [{transform_indices = @transform_0, window_bounds = array<i64: 3, 8, 16>}, {transform_indices = @transform_1, window_bounds = array<i64: 3, 8, 16>}]} {
    %c0 = arith.constant 0 : index
    %c0_0 = arith.constant 0 : index
    %c0_1 = arith.constant 0 : index
    %0 = vector.load %arg1[%c0, %c0_0, %c0_1] : memref<3x8x16xf32, #tpu.memory_space<vmem>>, vector<1x8x16xf32>
    %1 = vector.shape_cast %0 : vector<1x8x16xf32> to vector<8x16xf32>
    %cst = arith.constant 0.000000e+00 : f32
    %cst_2 = arith.constant 1.000000e+00 : f32
    %2 = vector.broadcast %cst : f32 to vector<8x16xf32>
    %3 = arith.maximumf %2, %1 : vector<8x16xf32>
    %4 = vector.broadcast %cst_2 : f32 to vector<8x16xf32>
    %5 = arith.minimumf %4, %3 : vector<8x16xf32>
    %cst_3 = arith.constant 2.550000e+02 : f32
    %6 = vector.broadcast %cst_3 : f32 to vector<8x16xf32>
    %7 = arith.mulf %5, %6 : vector<8x16xf32>
    %8 = math.floor %7 : vector<8x16xf32>
    %c1 = arith.constant 1 : index
    %c0_4 = arith.constant 0 : index
    %c0_5 = arith.constant 0 : index
    %9 = vector.load %arg1[%c1, %c0_4, %c0_5] : memref<3x8x16xf32, #tpu.memory_space<vmem>>, vector<1x8x16xf32>
    %10 = vector.shape_cast %9 : vector<1x8x16xf32> to vector<8x16xf32>
    %cst_6 = arith.constant 0.000000e+00 : f32
    %cst_7 = arith.constant 1.000000e+00 : f32
    %11 = vector.broadcast %cst_6 : f32 to vector<8x16xf32>
    %12 = arith.maximumf %11, %10 : vector<8x16xf32>
    %13 = vector.broadcast %cst_7 : f32 to vector<8x16xf32>
    %14 = arith.minimumf %13, %12 : vector<8x16xf32>
    %cst_8 = arith.constant 2.550000e+02 : f32
    %15 = vector.broadcast %cst_8 : f32 to vector<8x16xf32>
    %16 = arith.mulf %14, %15 : vector<8x16xf32>
    %17 = math.floor %16 : vector<8x16xf32>
    %c2 = arith.constant 2 : index
    %c0_9 = arith.constant 0 : index
    %c0_10 = arith.constant 0 : index
    %18 = vector.load %arg1[%c2, %c0_9, %c0_10] : memref<3x8x16xf32, #tpu.memory_space<vmem>>, vector<1x8x16xf32>
    %19 = vector.shape_cast %18 : vector<1x8x16xf32> to vector<8x16xf32>
    %cst_11 = arith.constant 0.000000e+00 : f32
    %cst_12 = arith.constant 1.000000e+00 : f32
    %20 = vector.broadcast %cst_11 : f32 to vector<8x16xf32>
    %21 = arith.maximumf %20, %19 : vector<8x16xf32>
    %22 = vector.broadcast %cst_12 : f32 to vector<8x16xf32>
    %23 = arith.minimumf %22, %21 : vector<8x16xf32>
    %cst_13 = arith.constant 2.550000e+02 : f32
    %24 = vector.broadcast %cst_13 : f32 to vector<8x16xf32>
    %25 = arith.mulf %23, %24 : vector<8x16xf32>
    %26 = math.floor %25 : vector<8x16xf32>
    %27 = arith.maximumf %8, %17 : vector<8x16xf32>
    %28 = arith.maximumf %27, %26 : vector<8x16xf32>
    %29 = arith.minimumf %8, %17 : vector<8x16xf32>
    %30 = arith.minimumf %29, %26 : vector<8x16xf32>
    %31 = arith.subf %28, %30 : vector<8x16xf32>
    %cst_14 = arith.constant 1.000000e+00 : f32
    %32 = vector.broadcast %cst_14 : f32 to vector<8x16xf32>
    %33 = arith.maximumf %28, %32 : vector<8x16xf32>
    %cst_15 = arith.constant 1.000000e+00 : f32
    %34 = vector.broadcast %cst_15 : f32 to vector<8x16xf32>
    %35 = arith.divf %34, %33 : vector<8x16xf32>
    %cst_16 = arith.constant 2.550000e+02 : f32
    %36 = vector.broadcast %cst_16 : f32 to vector<8x16xf32>
    %37 = arith.mulf %36, %31 : vector<8x16xf32>
    %38 = arith.mulf %37, %35 : vector<8x16xf32>
    %cst_17 = arith.constant 5.000000e-01 : f32
    %39 = vector.broadcast %cst_17 : f32 to vector<8x16xf32>
    %40 = arith.addf %38, %39 : vector<8x16xf32>
    %41 = math.floor %40 : vector<8x16xf32>
    %cst_18 = arith.constant 1.000000e+00 : f32
    %42 = vector.broadcast %cst_18 : f32 to vector<8x16xf32>
    %43 = arith.maximumf %31, %42 : vector<8x16xf32>
    %cst_19 = arith.constant 1.000000e+00 : f32
    %44 = vector.broadcast %cst_19 : f32 to vector<8x16xf32>
    %45 = arith.divf %44, %43 : vector<8x16xf32>
    %46 = arith.cmpf oeq, %28, %8 : vector<8x16xf32>
    %47 = arith.subf %17, %26 : vector<8x16xf32>
    %48 = arith.cmpf oeq, %28, %17 : vector<8x16xf32>
    %49 = arith.subf %26, %8 : vector<8x16xf32>
    %cst_20 = arith.constant 2.000000e+00 : f32
    %50 = vector.broadcast %cst_20 : f32 to vector<8x16xf32>
    %51 = arith.mulf %50, %31 : vector<8x16xf32>
    %52 = arith.addf %49, %51 : vector<8x16xf32>
    %53 = arith.subf %8, %17 : vector<8x16xf32>
    %cst_21 = arith.constant 4.000000e+00 : f32
    %54 = vector.broadcast %cst_21 : f32 to vector<8x16xf32>
    %55 = arith.mulf %54, %31 : vector<8x16xf32>
    %56 = arith.addf %53, %55 : vector<8x16xf32>
    %57 = arith.select %48, %52, %56 : vector<8x16xi1>, vector<8x16xf32>
    %58 = arith.select %46, %47, %57 : vector<8x16xi1>, vector<8x16xf32>
    %cst_22 = arith.constant 3.000000e+01 : f32
    %59 = vector.broadcast %cst_22 : f32 to vector<8x16xf32>
    %60 = arith.mulf %58, %59 : vector<8x16xf32>
    %61 = arith.mulf %60, %45 : vector<8x16xf32>
    %cst_23 = arith.constant 5.000000e-01 : f32
    %62 = vector.broadcast %cst_23 : f32 to vector<8x16xf32>
    %63 = arith.addf %61, %62 : vector<8x16xf32>
    %64 = math.floor %63 : vector<8x16xf32>
    %cst_24 = arith.constant 0.000000e+00 : f32
    %65 = vector.broadcast %cst_24 : f32 to vector<8x16xf32>
    %66 = arith.cmpf olt, %64, %65 : vector<8x16xf32>
    %cst_25 = arith.constant 1.800000e+02 : f32
    %67 = vector.broadcast %cst_25 : f32 to vector<8x16xf32>
    %68 = arith.addf %64, %67 : vector<8x16xf32>
    %69 = arith.select %66, %68, %64 : vector<8x16xi1>, vector<8x16xf32>
    %cst_26 = arith.constant 0.00392156886 : f32
    %70 = vector.broadcast %cst_26 : f32 to vector<8x16xf32>
    %71 = arith.mulf %69, %70 : vector<8x16xf32>
    %c0_27 = arith.constant 0 : index
    %c0_28 = arith.constant 0 : index
    %c0_29 = arith.constant 0 : index
    %72 = vector.load %arg2[%c0_27, %c0_28, %c0_29] : memref<3x8x16xf32, #tpu.memory_space<vmem>>, vector<1x8x16xf32>
    %73 = vector.shape_cast %72 : vector<1x8x16xf32> to vector<8x16xf32>
    %74 = vector.shape_cast %71 : vector<8x16xf32> to vector<1x8x16xf32>
    tpu.vector_store %arg2[%c0_27, %c0_28, %c0_29], %74 {strides = array<i32>} : memref<3x8x16xf32, #tpu.memory_space<vmem>>, vector<1x8x16xf32>,
    %cst_30 = arith.constant 0.00392156886 : f32
    %75 = vector.broadcast %cst_30 : f32 to vector<8x16xf32>
    %76 = arith.mulf %41, %75 : vector<8x16xf32>
    %c1_31 = arith.constant 1 : index
    %c0_32 = arith.constant 0 : index
    %c0_33 = arith.constant 0 : index
    %77 = vector.load %arg2[%c1_31, %c0_32, %c0_33] : memref<3x8x16xf32, #tpu.memory_space<vmem>>, vector<1x8x16xf32>
    %78 = vector.shape_cast %77 : vector<1x8x16xf32> to vector<8x16xf32>
    %79 = vector.shape_cast %76 : vector<8x16xf32> to vector<1x8x16xf32>
    tpu.vector_store %arg2[%c1_31, %c0_32, %c0_33], %79 {strides = array<i32>} : memref<3x8x16xf32, #tpu.memory_space<vmem>>, vector<1x8x16xf32>,
    %cst_34 = arith.constant 0.00392156886 : f32
    %80 = vector.broadcast %cst_34 : f32 to vector<8x16xf32>
    %81 = arith.mulf %28, %80 : vector<8x16xf32>
    %c2_35 = arith.constant 2 : index
    %c0_36 = arith.constant 0 : index
    %c0_37 = arith.constant 0 : index
    %82 = vector.load %arg2[%c2_35, %c0_36, %c0_37] : memref<3x8x16xf32, #tpu.memory_space<vmem>>, vector<1x8x16xf32>
    %83 = vector.shape_cast %82 : vector<1x8x16xf32> to vector<8x16xf32>
    %84 = vector.shape_cast %81 : vector<8x16xf32> to vector<1x8x16xf32>
    tpu.vector_store %arg2[%c2_35, %c0_36, %c0_37], %84 {strides = array<i32>} : memref<3x8x16xf32, #tpu.memory_space<vmem>>, vector<1x8x16xf32>,
    return
  }
  func.func @transform_0(%arg0: i32) -> (i32, i32, i32) {
    %c0_i32 = arith.constant 0 : i32
    %c0_i32_0 = arith.constant 0 : i32
    %c0_i32_1 = arith.constant 0 : i32
    return %c0_i32, %arg0, %c0_i32_0 : i32, i32, i32
  }
  func.func @transform_1(%arg0: i32) -> (i32, i32, i32) {
    %c0_i32 = arith.constant 0 : i32
    %c0_i32_0 = arith.constant 0 : i32
    %c0_i32_1 = arith.constant 0 : i32
    return %c0_i32, %arg0, %c0_i32_0 : i32, i32, i32
  }
}

</mosaic_0001>

<bundles_post_ra>
// kernel: tpu_custom_call.1
= control target key start
LH: loop header
LB: loop body
LE: loop exit
PB: predicated region body
PF: predicated region fallthrough
CT: control target
= control target key end

     0   :  { %6 = vsyncpa [#allocation3], 0  ;;  %s630_s0 = inlined_call_operand.hbm [shape: f32[3,16,16], index: 0, kind: input, shape index: {}]   ;;  %s631_s1 = inlined_call_operand.hbm [shape: f32[3,16,16], index: 1, kind: output, shape index: {}]  }
   0x1   :  { %8 = vsyncpa [#allocation3 + $0x1], 0 }
   0x2   :  { %9 = vsyncpa [#allocation4], 0 }
   0x3   :  { %11 = vsyncpa [#allocation4 + $0x1], 0  ;;  %s465_s6 = smov 0   ;;  %s467_s7 = smov 0  }
   0x4   :  { %s469_s8 = smov 0   ;;  %s471_s9 = smov 0  }
   0x5 LB: > { %s486_s10 = sadd.s32 4294967295, %s445_s9   ;;  %s279_s11 = sadd.s32 4294967294, %s445_s9   ;;  %s445_s9 = sphi %s471_s9, %s644_s9   ;;  %s441_s8 = sphi %s469_s8, %s643_s8   ;;  %s437_s7 = sphi %s467_s7, %s642_s7   ;;  %s433_s6 = sphi %s465_s6, %s641_s6  }
   0x6   : > { %s490_s12 = sadd.s32 1, %s445_s9   ;;  %s24_s13 = sadd.s32 1, %s441_s8 }
   0x7   : > { %s21_s14 = ssub.s32 %s445_s9, %s490_s12  ;;  %p31_p0 = scmp.ne.s32.totalorder %s441_s8, %s437_s7 }
   0x8   : > { %p22_p1 = scmp.eq.s32.totalorder %s21_s14, 0  ;;  %p32_p2 = scmp.eq.s32.totalorder %s445_s9, 0 }
   0x9   : > { %p37_p3 = scmp.ne.s32.totalorder %s437_s7, %s433_s6  ;;  %p38_p4 = scmp.eq.s32.totalorder %s486_s10, 0 }
   0xa   : > { %s502_s15 = scalar_select %p22_p1, %s441_s8, %s24_s13  }
   0xb   : > { %p33_p5 = por %p32_p2, %p31_p0  ;;  %p504_p6 = por %p38_p4, %p37_p3 }
   0xc   : > { %p61_p7 = scmp.eq.s32.totalorder %s486_s10, 1  ;;  %p67_p8 = scmp.eq.s32.totalorder %s279_s11, 1 }
   0xd   : > { %p305_p10 = scmp.lt.s32.totalorder %s445_s9, 2  ;;  %s87_s19 = sand.u32 1, %s441_s8  }
   0xe   : > { %p511_p11 = por %p61_p7, %p31_p0  ;;  %p515_p12 = por %p67_p8, %p37_p3 }
   0xf   : > { %s282_s20 = sshll.u32 %s445_s9, 7  ;;  %s291_s21 = smul.u32 24, %s87_s19 }
  0x10   : > { %s634_s17 = scalar_select %p511_p11, 1, 0 }
  0x11   : > { %s635_s18 = scalar_select %p515_p12, 1, 0 }
  0x12   : > { %s524_s24 = scalar_lea.hbm %s630_s0, %s282_s20  ;;  %p526_p13 = pnand %p305_p10, %p33_p5 }
  0x13   : > { %s91_s26 = scalar_lea.vmem [#allocation2], %s291_s21  ;;  %s533_s28 = scalar_lea.sflag [#allocation3], %s87_s19 }
  0x14   : > { %s97_s27 = sshll.u32 %s91_s26, 4  ;;  %s349_s29 = scalar_lea.hbm %s524_s24, 384  ;;  %s530_s27 = int_to_ptr.vmem [resolvable:$true] %s97_s27 }
  0x15   : > { %p350_p1 = scmp.ne.s32.totalorder %s524_s24, %s349_s29  ;;  %p351_p2 = pneg %p526_p13 }
  0x16   : > { %s354_s3 = scalar_lea.hbm %s630_s0, 768  ;;  %p355_p5 = scmp.lt.u32.totalorder %s524_s24, %s630_s0 }
  0x17   : > { %p352_p3 = pnand %p351_p2, %p350_p1  ;;  %p356_p7 = scmp.lt.u32.totalorder %s354_s3, %s349_s29 }
  0x18   : > { %p358_p10 = scmp.lt.u32.totalorder %s349_s29, %s524_s24 }
  0x19   : > { %p353_p4 = pneg %p352_p3  ;;  %p357_p8 = por %p356_p7, %p355_p5 }
  0x1b   : > { %p359_p9 = por %p358_p10, %p357_p8 }
  0x1d   : > { %p360_p0 = pnand %p359_p9, %p353_p4 }
  0x1f   : > { %363 = shalt.err (!%p360_p0)
}
  0x20   : > { %s364_s11 = scalar_lea.vmem %s530_s27, 384  ;;  %s447_s13 = smov [#allocation2]  }
  0x21   : > { %p365_p1 = scmp.ne.s32.totalorder %s530_s27, %s364_s11  ;;  %s369_s14 = sshll.u32 %s447_s13, 4  ;;  %s370_s14 = int_to_ptr.vmem [resolvable:$false] %s369_s14 }
  0x22   : > { %s371_s19 = scalar_lea.vmem %s370_s14, 768  ;;  %p372_p11 = scmp.lt.s32.totalorder %s530_s27, %s370_s14 }
  0x23   : > { %p367_p3 = pnand %p365_p1, %p351_p2  ;;  %p373_p5 = scmp.lt.s32.totalorder %s371_s19, %s364_s11 }
  0x25   : > { %p368_p12 = pneg %p367_p3  ;;  %p374_p7 = por %p373_p5, %p372_p11 }
  0x27   : > { %p375_p8 = pnand %p374_p7, %p368_p12 }
  0x29   : > { %378 = shalt.err (!%p375_p8)
}
  0x2a   : > { %s448_s20 = smov 256   ;;  %s449_s21 = smov 128  }
  0x2b   : > { %s450_s22 = smov 8   ;;  %p105_p9 = scmp.lt.s32.totalorder %s445_s9, 3 }
  0x2c   : > { %300 = dma.hbm_to_vmem [thread:$0]  (!%p526_p13), %s524_s24, 384, %s530_s27, %s533_s28, %s448_s20, %s449_s21, %s450_s22  }
  0x2d   : > { %p637_p0 = scmp.ge.s32.totalorder %s445_s9, 1 }
  0x2f   : > { %p106_p2 = pnand %p637_p0, %p105_p9 }
  0x30   : > { %s565_s23 = sand.u32 (!%p106_p2), 1, %s437_s7  }
  0x31   : > { %109 = sbr.rel (%p106_p2) target bundleno = 112 (0x70), region = 24  ;;  %s112_s29 = scalar_lea.sflag (!%p106_p2), [#allocation3], %s565_s23 }
  0x32   : > { %s292_s26 = smul.u32 (!%p106_p2), 24, %s565_s23 }
  0x34   : > { %s115_s30 = scalar_lea.vmem (!%p106_p2), [#allocation2], %s292_s26 }
  0x38   : > { %424 = dma.done.wait (%p504_p6), %s112_s29, 384  }
  0x39   : > { %426 = vsyncadd (%p504_p6), %s112_s29, 4294966912  ;;  %v134_v0 = vld [vmem:[%s115_s30] sm:$0xff]  ;;  %v284_v1 = vld [vmem:[%s115_s30 + $0x8] sm:$0xff]  ;;  %vm185_vm0 = vcmask 130048   ;;  %s133_s16 = scalar_lea.vmem [#allocation5], %s292_s26  ;;  %s288_s25 = sshll.u32 %s486_s10, 7 }
  0x3a   : > { %v285_v2 = vld [vmem:[%s115_s30 + $0x10] sm:$0xff]  ;;  %v135_v3 = vmax.f32 %v134_v0, 0.0  ;;  %v141_v4 = vmax.f32 %v284_v1, 0.0  ;;  %s206_s24 = sshll.u32 %s133_s16, 4  ;;  %s585_s2 = scalar_lea.hbm %s631_s1, %s288_s25  ;;  %s580_s24 = int_to_ptr.vmem [resolvable:$true] %s206_s24 }
  0x3b   : > { %v147_v5 = vmax.f32 %v285_v2, 0.0  ;;  %s194_s3 = scalar_lea.sflag [#allocation4], %s565_s23  ;;  %s379_s10 = scalar_lea.vmem %s580_s24, 384 }
  0x3c   : > { %v136_v6 = vmin.f32 %v135_v3, 1.0  ;;  %v142_v7 = vmin.f32 %v141_v4, 1.0  ;;  %p380_p6 = scmp.ne.s32.totalorder %s580_s24, %s379_s10  ;;  %p638_p11 = scmp.ne.s32.totalorder %s634_s17, 0 }
  0x3d   : > { %v148_v8 = vmin.f32 %v147_v5, 1.0  ;;  %s451_s4 = smov [#allocation5]  }
  0x3e   : > { %v137_v9 = vmul.f32 255.0, %v136_v6  ;;  %v143_v10 = vmul.f32 255.0, %v142_v7  ;;  %p381_p12 = pnand %p380_p6, %p638_p11  ;;  %s383_s5 = sshll.u32 %s451_s4, 4  ;;  %s384_s5 = int_to_ptr.vmem [resolvable:$false] %s383_s5 }
  0x3f   : > { %v149_v11 = vmul.f32 255.0, %v148_v8  ;;  %s385_s11 = scalar_lea.vmem %s384_s5, 768  ;;  %p386_p4 = scmp.lt.s32.totalorder %s580_s24, %s384_s5 }
  0x40   : > { %v138_v12 = vfloor.f32 %v137_v9  ;;  %v144_v13 = vfloor.f32 %v143_v10  ;;  %p382_p13 = pneg %p381_p12  ;;  %p387_p10 = scmp.lt.s32.totalorder %s385_s11, %s379_s10 }
  0x41   : > { %v150_v14 = vfloor.f32 %v149_v11 }
  0x42   : > { %v151_v15 = vmax.f32 %v138_v12, %v144_v13  ;;  %v153_v16 = vmin.f32 %v138_v12, %v144_v13  ;;  %v172_v21 = vsub.f32 %v138_v12, %v144_v13  ;;  %p388_p1 = por %p387_p10, %p386_p4 }
  0x43   : > { %v169_v20 = vsub.f32 %v150_v14, %v138_v12  ;;  %v167_v27 = vsub.f32 %v144_v13, %v150_v14 }
  0x44   : > { %v152_v17 = vmax.f32 %v151_v15, %v150_v14  ;;  %v154_v18 = vmin.f32 %v153_v16, %v150_v14  ;;  %p389_p3 = pnand %p388_p1, %p382_p13 }
  0x46   : > { %v155_v19 = vsub.f32 %v152_v17, %v154_v18  ;;  %v156_v22 = vmax.f32 %v152_v17, 1.0  ;;  %v190_v23 = vmul.f32 0.003921569, %v152_v17  ;;  %vm168_vm1 = vcmp.eq.f32.partialorder %v152_v17, %v144_v13 }
  0x47   : > { %vm166_vm2 = vcmp.eq.f32.partialorder %v152_v17, %v138_v12 }
  0x48   : > { %v163_v24 = vmax.f32 %v155_v19, 1.0  ;;  %v170_v25 = vmul.f32 2.0, %v155_v19  ;;  %v173_v26 = vmul.f32 4.0, %v155_v19  ;;  %345 = vrcp.f32 %v156_v22  ;;  %287 = vst.msk [vmem:[%s133_s16 + $0x10] sm:$0xff] %vm185_vm0, %v190_v23 }
  0x49   : > { %v159_v32 = vmul.f32 255.0, %v155_v19 }
  0x4a   : > { %347 = vrcp.f32 %v163_v24  ;;  %v171_v28 = vadd.f32 %v170_v25, %v169_v20  ;;  %v174_v29 = vadd.f32 %v173_v26, %v172_v21 }
  0x4c   : > { %v175_v30 = vsel %vm168_vm1, %v171_v28, %v174_v29 }
  0x4d   : > { %v176_v31 = vsel %vm166_vm2, %v167_v27, %v175_v30 }
  0x4e   : > { %v177_v33 = vmul.f32 30.0, %v176_v31 }
  0x52   : > { %v346_v34 = vpop.eup %345 }
  0x53   : > { %v160_v35 = vmul.f32 %v346_v34, %v159_v32 }
  0x54   : > { %v348_v36 = vpop.eup %347 }
  0x55   : > { %v178_v37 = vmul.f32 %v348_v36, %v177_v33  ;;  %v161_v38 = vadd.f32 0.5, %v160_v35 }
  0x57   : > { %v179_v39 = vadd.f32 0.5, %v178_v37  ;;  %v162_v40 = vfloor.f32 %v161_v38 }
  0x59   : > { %v180_v41 = vfloor.f32 %v179_v39  ;;  %v187_v42 = vmul.f32 0.003921569, %v162_v40 }
  0x5b   : > { %vm181_vm3 = vcmp.lt.f32.partialorder %v180_v41, 0.0  ;;  %v182_v43 = vadd.f32 180.0, %v180_v41  ;;  %286 = vst.msk [vmem:[%s133_s16 + $0x8] sm:$0xff] %vm185_vm0, %v187_v42 }
  0x5d   : > { %v183_v44 = vsel %vm181_vm3, %v182_v43, %v180_v41 }
  0x5e   : > { %v184_v45 = vmul.f32 0.003921569, %v183_v44 }
  0x60   : > { %186 = vst.msk [vmem:[%s133_s16] sm:$0xff] %vm185_vm0, %v184_v45 }
  0x61   : > { %392 = shalt.err (!%p389_p3)
}
  0x62   : > { %s393_s13 = scalar_lea.hbm %s585_s2, 384  ;;  %s397_s20 = scalar_lea.hbm %s631_s1, 768 }
  0x63   : > { %p394_p5 = scmp.ne.s32.totalorder %s585_s2, %s393_s13  ;;  %p398_p9 = scmp.lt.u32.totalorder %s585_s2, %s631_s1 }
  0x64   : > { %p399_p0 = scmp.lt.u32.totalorder %s397_s20, %s393_s13  ;;  %p401_p6 = scmp.lt.u32.totalorder %s393_s13, %s585_s2 }
  0x65   : > { %p395_p7 = pnand %p394_p5, %p638_p11 }
  0x66   : > { %p400_p2 = por %p399_p0, %p398_p9 }
  0x67   : > { %p396_p8 = pneg %p395_p7 }
  0x68   : > { %p402_p12 = por %p401_p6, %p400_p2 }
  0x6a   : > { %p403_p13 = pnand %p402_p12, %p396_p8 }
  0x6c   : > { %406 = shalt.err (!%p403_p13)
}
  0x6d   : > { %s452_s26 = smov 128   ;;  %s453_s29 = smov 256  }
  0x6e   : > { %s454_s30 = smov 8  }
  0x6f   : > { %295 = dma.vmem_to_hbm [thread:$0]  (%p638_p11), %s580_s24, 384, %s585_s2, %s194_s3, %s452_s26, %s453_s29, %s454_s30  }
  0x70 PF: > { %s221_s16 = sand.u32 1, %s433_s6   ;;  %p639_p4 = scmp.ne.s32.totalorder %s635_s18, 0 }
  0x71   : > { %p640_p10 = scmp.ge.s32.totalorder %s445_s9, 2  ;;  %s222_s25 = scalar_lea.sflag [#allocation4], %s221_s16 }
  0x73   : > { %p302_p1 = pnand %p640_p10, %p639_p4 }
  0x75   : > { %428 = dma.done.wait (!%p302_p1), %s222_s25, 384  }
  0x76   : > { %430 = vsyncadd (!%p302_p1), %s222_s25, 4294966912  ;;  %p14_p3 = scmp.ge.s32.totalorder %s490_s12, 4   ;;  %s641_s6 = smov %s437_s7 }
  0x77   : > { %s642_s7 = smov %s441_s8  ;;  %s643_s8 = smov %s502_s15 }
  0x78   : > { %s644_s9 = smov %s490_s12  ;;  %16 = sbr.rel (!%p14_p3) target bundleno = 5 (0x5), region = 73 }
  0x7f   :  { %227 = vsyncpa [#allocation3], 1 }
  0x80   :  { %229 = vsyncpa [#allocation3 + $0x1], 1 }
  0x81   :  { %230 = vsyncpa [#allocation4], 1 }
  0x82   :  { %232 = vsyncpa [#allocation4 + $0x1], 1 }

</bundles_post_ra>
